<compile_context>
chip_gen: v5e
topology: v5e:2x2
jax: 0.10.0
libtpu: 0.0.40
codegen_flags: <defaults>
</compile_context>

<pallas_src>
import functools

import jax
import jax.numpy as jnp
from jax.experimental import pallas as pl
from jax.experimental.pallas import tpu as pltpu


# ---------------------------------------------------------------------------
# Kernel: one batch tile (batch on lanes) through the whole MLP.
# ---------------------------------------------------------------------------
def _dve_kernel(num_mid, hidden_dim, comb_dim, ew_dtype, compute_dtype,
                in_ref, w_in_ref, *refs):
    if num_mid:
        w_mid_ref, b_mid_ref = refs[0], refs[1]
        refs = refs[2:]
    w_last_ref, b_last_ref, wc1h_ref, wc2_ref, bc2_ref, out_ref = refs

    def dot(w, a):
        return jnp.dot(w, a, preferred_element_type=jnp.float32)

    def act(z_f32, bias=None):
        # bias-add + ReLU in ew_dtype (bf16 on v6e/v7x, f32 on v5e); result is
        # cast to the compute dtype (bf16) for the next MXU dot.
        v = z_f32.astype(ew_dtype)
        if bias is not None:
            v = v + bias
        return jnp.maximum(v, 0).astype(compute_dtype)

    slab = in_ref[...]                                    # (K_in, tile_b) bf16

    # Layer-1 + comb-layer-1(y_hat) contributions in ONE MXU dot.
    #   w_in rows [0:hidden]            = [w1x | w1y | 0     | b1 ]
    #   w_in rows [hidden:hidden+comb]  = [ 0  |  0  | wc1_y | bc1]
    z = dot(w_in_ref[...], slab)                          # (hidden+comb, tile_b) f32
    h = act(z[:hidden_dim])                               # bias folded via ones row
    yhat_contrib = z[hidden_dim:hidden_dim + comb_dim]    # (comb, tile_b) f32 (+bc1)

    # (layer_num - 3) x [Linear(hidden, hidden) + ReLU]
    for l in range(num_mid):
        h = act(dot(w_mid_ref[l], h), b_mid_ref[l])

    # Linear(hidden, comb) + ReLU
    inter = act(dot(w_last_ref[...], h), b_last_ref[...])

    # comb layer 1: Linear(comb + label, comb) + ReLU  (y_hat part precomputed)
    c = act(dot(wc1h_ref[...], inter) + yhat_contrib)

    # comb layer 2: Linear(comb, 1) + Sigmoid  -> lane-dense (1, tile_b) row
    logits = dot(wc2_ref[...], c) + bc2_ref[...]
    out_ref[...] = jax.nn.sigmoid(logits)


# ---------------------------------------------------------------------------
# Tile / dtype selection heuristics.
# ---------------------------------------------------------------------------
def _pick_tile_b(batch):
    """Batch tile: <=512 (vreg-pressure cap, fills 256-wide v6e/v7x MXU);
    keep >= 2 grid steps when the batch allows (pipelining + v7x megacore)."""
    b128 = -(-batch // 128) * 128
    tile = min(512, b128)
    if b128 // tile < 2 and b128 >= 256:
        tile = max(128, (b128 // 2) // 128 * 128)
    return tile


def _default_ew_dtype():
    """bf16 elementwise on v6e/v7x (bf16 VALU); f32 on v5e and older."""
    try:
        kind = jax.devices()[0].device_kind.lower()
    except Exception:
        kind = ""
    return jnp.bfloat16 if ("v6" in kind or "v7" in kind) else jnp.float32


# ---------------------------------------------------------------------------
# Wrapper: layout transform, packing, padding, BlockSpecs, cost estimate.
# ---------------------------------------------------------------------------
def data_value_estimator(x, y, y_hat, params, *,
                         tile_b=None, compute_dtype=jnp.bfloat16, ew_dtype=None):
    """Forward pass of DataValueEstimator.

    x: (B, data_dim); y, y_hat: (B, label_dim).
    params: [(w1,b1), (w_mid,b_mid)*, (w_last,b_last), (wc1,bc1), (wc2,bc2)]
            with nn.Linear layout: weight (out, in), bias (out,).
    Returns (B, 1) float32.
    """
    B, data_dim = x.shape
    label_dim = y.shape[1]

    (w1, b1), *mid, (w_last, b_last), (wc1, bc1), (wc2, bc2) = params
    hidden_dim = w1.shape[0]
    comb_dim = wc1.shape[0]
    num_mid = len(mid)

    if ew_dtype is None:
        ew_dtype = _default_ew_dtype()
    if tile_b is None:
        tile_b = _pick_tile_b(B)

    n_tiles = pl.cdiv(B, tile_b)
    B_pad = n_tiles * tile_b

    K_xy = data_dim + label_dim
    K_in = data_dim + 2 * label_dim + 1          # [x ; y ; y_hat ; ones]

    f32 = jnp.float32

    # ---- one packed, batch-on-lanes input slab -----------------------------
    slab = jnp.concatenate(
        [x.astype(f32), y.astype(f32), y_hat.astype(f32),
         jnp.ones((B, 1), f32)], axis=1)                      # (B, K_in)
    if B_pad != B:
        slab = jnp.pad(slab, ((0, B_pad - B), (0, 0)))
    inT = slab.T.astype(compute_dtype)                        # (K_in, B_pad) bf16

    # ---- packed, VMEM-resident parameter operands --------------------------
    zeros = lambda r, c: jnp.zeros((r, c), f32)
    w_in = jnp.concatenate([
        jnp.concatenate([w1, zeros(hidden_dim, label_dim), b1[:, None]], axis=1),
        jnp.concatenate([zeros(comb_dim, K_xy), wc1[:, comb_dim:], bc1[:, None]],
                        axis=1),
    ], axis=0).astype(compute_dtype)                          # (hidden+comb, K_in)

    ops = [w_in]
    if num_mid:
        ops.append(jnp.stack([w for w, _ in mid]).astype(compute_dtype))
        ops.append(jnp.stack([b for _, b in mid])[:, :, None].astype(ew_dtype))
    ops += [
        w_last.astype(compute_dtype),                # (comb, hidden)
        b_last[:, None].astype(ew_dtype),            # (comb, 1)
        wc1[:, :comb_dim].astype(compute_dtype),     # (comb, comb)
        wc2.astype(compute_dtype),                   # (1, comb)
        bc2.reshape(1, 1).astype(jnp.float32),       # (1, 1)
    ]

    def const_spec(a):
        nd = a.ndim
        return pl.BlockSpec(a.shape, lambda i, _nd=nd: (0,) * _nd)

    in_specs = ([pl.BlockSpec((K_in, tile_b), lambda i: (0, i))]
                + [const_spec(a) for a in ops])
    out_specs = pl.BlockSpec((1, tile_b), lambda i: (0, i))

    macs = B_pad * ((hidden_dim + comb_dim) * K_in
                    + num_mid * hidden_dim * hidden_dim
                    + comb_dim * hidden_dim
                    + comb_dim * comb_dim
                    + comb_dim)
    bytes_accessed = int(inT.size * inT.dtype.itemsize
                         + sum(a.size * a.dtype.itemsize for a in ops)
                         + B_pad * 4)
    cost = pl.CostEstimate(flops=2 * macs, transcendentals=B_pad,
                           bytes_accessed=bytes_accessed)

    kernel = functools.partial(_dve_kernel, num_mid, hidden_dim, comb_dim,
                               ew_dtype, compute_dtype)

    out = pl.pallas_call(
        kernel,
        out_shape=jax.ShapeDtypeStruct((1, B_pad), jnp.float32),
        grid_spec=pltpu.PrefetchScalarGridSpec(
            num_scalar_prefetch=0,
            grid=(n_tiles,),
            in_specs=in_specs,
            out_specs=out_specs,
        ),
        compiler_params=pltpu.CompilerParams(
            dimension_semantics=("parallel",),          # megacore-shardable on v7x
            vmem_limit_bytes=32 * 1024 * 1024,          # explicit, v7x-safe budget
            # Let XLA fuse the concat/transpose/bf16-cast into the slab operand
            # instead of materializing a second copy of the inputs in HBM.
            allow_input_fusion=(True,) + (False,) * len(ops),
        ),
        cost_estimate=cost,
    )(inT, *ops)

    # (1, B_pad) lane-dense row -> (B, 1); drop batch padding (padded columns
    # hold garbage by construction and must never be reduced over).
    return out[:, :B].T


# ---------------------------------------------------------------------------
# Synthetic init + plain-JAX reference.
# ---------------------------------------------------------------------------
def init_params(key, data_dim, label_dim, hidden_dim, layer_num, comb_dim):
    """nn.Linear-style params: weight (out, in), bias (out,)."""
    dims = [(data_dim + label_dim, hidden_dim)]
    dims += [(hidden_dim, hidden_dim)] * (layer_num - 3)
    dims += [(hidden_dim, comb_dim), (comb_dim + label_dim, comb_dim), (comb_dim, 1)]
    keys = jax.random.split(key, 2 * len(dims))
    params = []
    for i, (d_in, d_out) in enumerate(dims):
        w = 0.1 * jax.random.normal(keys[2 * i], (d_out, d_in), jnp.float32)
        b = 0.05 * jax.random.normal(keys[2 * i + 1], (d_out,), jnp.float32)
        params.append((w, b))
    return params


def reference_forward(x, y, y_hat, params, *, quantize_dtype=None):
    """Plain-JAX reference mirroring the PyTorch module.  With quantize_dtype,
    inputs/params AND inter-layer activations are rounded through that dtype
    (matching the kernel's bf16 MXU feed); all math in f32."""
    q = (lambda a: a.astype(quantize_dtype).astype(jnp.float32)) \
        if quantize_dtype is not None else (lambda a: a)
    relu = lambda v: jnp.maximum(v, 0.0)
    (w1, b1), *mid, (w_last, b_last), (wc1, bc1), (wc2, bc2) = [
        (q(w), q(b)) for (w, b) in params]
    x, y, y_hat = q(x), q(y), q(y_hat)

    h = q(relu(jnp.concatenate([x, y], axis=1) @ w1.T + b1))
    for w, b in mid:
        h = q(relu(h @ w.T + b))
    inter = q(relu(h @ w_last.T + b_last))
    c = q(relu(jnp.concatenate([inter, y_hat], axis=1) @ wc1.T + bc1))
    return jax.nn.sigmoid(c @ wc2.T + bc2)


if __name__ == "__main__":
    data_dim, label_dim = 16, 4
    hidden_dim, comb_dim = 32, 16
    layer_num = 5                      # -> 2 hidden->hidden layers in inter_layers

    key = jax.random.PRNGKey(0)
    kp, kd = jax.random.split(key)
    params = init_params(kp, data_dim, label_dim, hidden_dim, layer_num, comb_dim)

    # batch=200: exercises padding + 2-step grid at tile_b=128
    # batch=1024: exercises the large tile_b=512 path with 2 parallel grid steps
    for batch in (200, 1024):
        kx, ky, kyh, kd = jax.random.split(kd, 4)
        x = jax.random.normal(kx, (batch, data_dim), jnp.float32)
        y = jax.random.normal(ky, (batch, label_dim), jnp.float32)       # labels
        y_hat = jax.random.normal(kyh, (batch, label_dim), jnp.float32)  # predictions

        out = jax.block_until_ready(data_value_estimator(x, y, y_hat, params))
        assert out.shape == (batch, 1), out.shape

        ref = reference_forward(x, y, y_hat, params, quantize_dtype=jnp.bfloat16)
        max_err = float(jnp.max(jnp.abs(out - ref)))
        assert max_err < 2e-2, (batch, max_err, out[:4].ravel(), ref[:4].ravel())

    print("KERNEL_OK")
</pallas_src>

<mosaic_0001>
module attributes {stable_mosaic.version = 11 : i64} {
  func.func @_dve_kernel(%arg0: i32, %arg1: memref<25x128xbf16, #tpu.memory_space<vmem>>, %arg2: memref<48x25xbf16, #tpu.memory_space<vmem>>, %arg3: memref<2x32x32xbf16, #tpu.memory_space<vmem>>, %arg4: memref<2x32x1xf32, #tpu.memory_space<vmem>>, %arg5: memref<16x32xbf16, #tpu.memory_space<vmem>>, %arg6: memref<16x1xf32, #tpu.memory_space<vmem>>, %arg7: memref<16x16xbf16, #tpu.memory_space<vmem>>, %arg8: memref<1x16xbf16, #tpu.memory_space<vmem>>, %arg9: memref<1x1xf32, #tpu.memory_space<vmem>>, %arg10: memref<1x128xf32, #tpu.memory_space<vmem>>) attributes {dimension_semantics = [#tpu.dimension_semantics<parallel>], iteration_bounds = array<i64: 2>, scalar_prefetch = 0 : i64, scratch_operands = 0 : i64, tpu.core_type = #tpu.core_type<tc>, window_params = [{transform_indices = @transform_0, window_bounds = array<i64: 25, 128>}, {pipeline_mode = #tpu.pipeline_mode<synchronous>, transform_indices = @transform_1, window_bounds = array<i64: 48, 25>}, {pipeline_mode = #tpu.pipeline_mode<synchronous>, transform_indices = @transform_2, window_bounds = array<i64: 2, 32, 32>}, {pipeline_mode = #tpu.pipeline_mode<synchronous>, transform_indices = @transform_3, window_bounds = array<i64: 2, 32, 1>}, {pipeline_mode = #tpu.pipeline_mode<synchronous>, transform_indices = @transform_4, window_bounds = array<i64: 16, 32>}, {pipeline_mode = #tpu.pipeline_mode<synchronous>, transform_indices = @transform_5, window_bounds = array<i64: 16, 1>}, {pipeline_mode = #tpu.pipeline_mode<synchronous>, transform_indices = @transform_6, window_bounds = array<i64: 16, 16>}, {pipeline_mode = #tpu.pipeline_mode<synchronous>, transform_indices = @transform_7, window_bounds = array<i64: 1, 16>}, {pipeline_mode = #tpu.pipeline_mode<synchronous>, transform_indices = @transform_8, window_bounds = array<i64: 1, 1>}, {transform_indices = @transform_9, window_bounds = array<i64: 1, 128>}]} {
    %c0 = arith.constant 0 : index
    %c0_0 = arith.constant 0 : index
    %0 = vector.load %arg1[%c0, %c0_0] : memref<25x128xbf16, #tpu.memory_space<vmem>>, vector<25x128xbf16>
    %c0_1 = arith.constant 0 : index
    %c0_2 = arith.constant 0 : index
    %1 = vector.load %arg2[%c0_1, %c0_2] : memref<48x25xbf16, #tpu.memory_space<vmem>>, vector<48x25xbf16>
    %cst = arith.constant dense<0.000000e+00> : vector<48x128xf32>
    %2 = tpu.matmul %1, %0, %cst {dimension_numbers = #tpu.dot_dimension_numbers<[1], [0], [0], [1], [0, 0, 1, 1], [], []>} : vector<48x25xbf16>, vector<25x128xbf16>, vector<48x128xf32> -> vector<48x128xf32>
    %3 = vector.extract_strided_slice %2 {offsets = [0, 0], sizes = [32, 128], strides = [1, 1]} : vector<48x128xf32> to vector<32x128xf32>
    %cst_3 = arith.constant 0.000000e+00 : f32
    %4 = vector.broadcast %cst_3 : f32 to vector<32x128xf32>
    %5 = arith.maximumf %3, %4 : vector<32x128xf32>
    %6 = arith.truncf %5 : vector<32x128xf32> to vector<32x128xbf16>
    %7 = vector.extract_strided_slice %2 {offsets = [32, 0], sizes = [16, 128], strides = [1, 1]} : vector<48x128xf32> to vector<16x128xf32>
    %c0_4 = arith.constant 0 : index
    %c0_5 = arith.constant 0 : index
    %c0_6 = arith.constant 0 : index
    %8 = vector.load %arg3[%c0_4, %c0_5, %c0_6] : memref<2x32x32xbf16, #tpu.memory_space<vmem>>, vector<1x32x32xbf16>
    %9 = vector.shape_cast %8 : vector<1x32x32xbf16> to vector<32x32xbf16>
    %cst_7 = arith.constant dense<0.000000e+00> : vector<32x128xf32>
    %10 = tpu.matmul %9, %6, %cst_7 {dimension_numbers = #tpu.dot_dimension_numbers<[1], [0], [0], [1], [0, 0, 1, 1], [], []>} : vector<32x32xbf16>, vector<32x128xbf16>, vector<32x128xf32> -> vector<32x128xf32>
    %c0_8 = arith.constant 0 : index
    %c0_9 = arith.constant 0 : index
    %c0_10 = arith.constant 0 : index
    %11 = vector.load %arg4[%c0_8, %c0_9, %c0_10] : memref<2x32x1xf32, #tpu.memory_space<vmem>>, vector<1x32x1xf32>
    %12 = vector.shape_cast %11 : vector<1x32x1xf32> to vector<32x1xf32>
    %13 = vector.broadcast %12 : vector<32x1xf32> to vector<32x128xf32>
    %14 = arith.addf %10, %13 : vector<32x128xf32>
    %cst_11 = arith.constant 0.000000e+00 : f32
    %15 = vector.broadcast %cst_11 : f32 to vector<32x128xf32>
    %16 = arith.maximumf %14, %15 : vector<32x128xf32>
    %17 = arith.truncf %16 : vector<32x128xf32> to vector<32x128xbf16>
    %c1 = arith.constant 1 : index
    %c0_12 = arith.constant 0 : index
    %c0_13 = arith.constant 0 : index
    %18 = vector.load %arg3[%c1, %c0_12, %c0_13] : memref<2x32x32xbf16, #tpu.memory_space<vmem>>, vector<1x32x32xbf16>
    %19 = vector.shape_cast %18 : vector<1x32x32xbf16> to vector<32x32xbf16>
    %cst_14 = arith.constant dense<0.000000e+00> : vector<32x128xf32>
    %20 = tpu.matmul %19, %17, %cst_14 {dimension_numbers = #tpu.dot_dimension_numbers<[1], [0], [0], [1], [0, 0, 1, 1], [], []>} : vector<32x32xbf16>, vector<32x128xbf16>, vector<32x128xf32> -> vector<32x128xf32>
    %c1_15 = arith.constant 1 : index
    %c0_16 = arith.constant 0 : index
    %c0_17 = arith.constant 0 : index
    %21 = vector.load %arg4[%c1_15, %c0_16, %c0_17] : memref<2x32x1xf32, #tpu.memory_space<vmem>>, vector<1x32x1xf32>
    %22 = vector.shape_cast %21 : vector<1x32x1xf32> to vector<32x1xf32>
    %23 = vector.broadcast %22 : vector<32x1xf32> to vector<32x128xf32>
    %24 = arith.addf %20, %23 : vector<32x128xf32>
    %cst_18 = arith.constant 0.000000e+00 : f32
    %25 = vector.broadcast %cst_18 : f32 to vector<32x128xf32>
    %26 = arith.maximumf %24, %25 : vector<32x128xf32>
    %27 = arith.truncf %26 : vector<32x128xf32> to vector<32x128xbf16>
    %c0_19 = arith.constant 0 : index
    %c0_20 = arith.constant 0 : index
    %28 = vector.load %arg5[%c0_19, %c0_20] : memref<16x32xbf16, #tpu.memory_space<vmem>>, vector<16x32xbf16>
    %cst_21 = arith.constant dense<0.000000e+00> : vector<16x128xf32>
    %29 = tpu.matmul %28, %27, %cst_21 {dimension_numbers = #tpu.dot_dimension_numbers<[1], [0], [0], [1], [0, 0, 1, 1], [], []>} : vector<16x32xbf16>, vector<32x128xbf16>, vector<16x128xf32> -> vector<16x128xf32>
    %c0_22 = arith.constant 0 : index
    %c0_23 = arith.constant 0 : index
    %30 = vector.load %arg6[%c0_22, %c0_23] : memref<16x1xf32, #tpu.memory_space<vmem>>, vector<16x1xf32>
    %31 = vector.broadcast %30 : vector<16x1xf32> to vector<16x128xf32>
    %32 = arith.addf %29, %31 : vector<16x128xf32>
    %cst_24 = arith.constant 0.000000e+00 : f32
    %33 = vector.broadcast %cst_24 : f32 to vector<16x128xf32>
    %34 = arith.maximumf %32, %33 : vector<16x128xf32>
    %35 = arith.truncf %34 : vector<16x128xf32> to vector<16x128xbf16>
    %c0_25 = arith.constant 0 : index
    %c0_26 = arith.constant 0 : index
    %36 = vector.load %arg7[%c0_25, %c0_26] : memref<16x16xbf16, #tpu.memory_space<vmem>>, vector<16x16xbf16>
    %cst_27 = arith.constant dense<0.000000e+00> : vector<16x128xf32>
    %37 = tpu.matmul %36, %35, %cst_27 {dimension_numbers = #tpu.dot_dimension_numbers<[1], [0], [0], [1], [0, 0, 1, 1], [], []>} : vector<16x16xbf16>, vector<16x128xbf16>, vector<16x128xf32> -> vector<16x128xf32>
    %38 = arith.addf %37, %7 : vector<16x128xf32>
    %cst_28 = arith.constant 0.000000e+00 : f32
    %39 = vector.broadcast %cst_28 : f32 to vector<16x128xf32>
    %40 = arith.maximumf %38, %39 : vector<16x128xf32>
    %41 = arith.truncf %40 : vector<16x128xf32> to vector<16x128xbf16>
    %c0_29 = arith.constant 0 : index
    %c0_30 = arith.constant 0 : index
    %42 = vector.load %arg8[%c0_29, %c0_30] : memref<1x16xbf16, #tpu.memory_space<vmem>>, vector<1x16xbf16>
    %cst_31 = arith.constant dense<0.000000e+00> : vector<1x128xf32>
    %43 = tpu.matmul %42, %41, %cst_31 {dimension_numbers = #tpu.dot_dimension_numbers<[1], [0], [0], [1], [0, 0, 1, 1], [], []>} : vector<1x16xbf16>, vector<16x128xbf16>, vector<1x128xf32> -> vector<1x128xf32>
    %c0_32 = arith.constant 0 : index
    %c0_33 = arith.constant 0 : index
    %44 = vector.load %arg9[%c0_32, %c0_33] : memref<1x1xf32, #tpu.memory_space<vmem>>, vector<1x1xf32>
    %45 = vector.broadcast %44 : vector<1x1xf32> to vector<1x128xf32>
    %46 = arith.addf %43, %45 : vector<1x128xf32>
    %47 = arith.negf %46 : vector<1x128xf32>
    %48 = math.exp %47 : vector<1x128xf32>
    %cst_34 = arith.constant 1.000000e+00 : f32
    %49 = vector.broadcast %cst_34 : f32 to vector<1x128xf32>
    %50 = arith.addf %49, %48 : vector<1x128xf32>
    %51 = arith.divf %49, %50 : vector<1x128xf32>
    %c0_35 = arith.constant 0 : index
    %c0_36 = arith.constant 0 : index
    %52 = vector.load %arg10[%c0_35, %c0_36] : memref<1x128xf32, #tpu.memory_space<vmem>>, vector<1x128xf32>
    tpu.vector_store %arg10[%c0_35, %c0_36], %51 {strides = array<i32>} : memref<1x128xf32, #tpu.memory_space<vmem>>, vector<1x128xf32>,
    return
  }
  func.func @transform_0(%arg0: i32) -> (i32, i32) {
    %c0_i32 = arith.constant 0 : i32
    %c0_i32_0 = arith.constant 0 : i32
    return %c0_i32, %arg0 : i32, i32
  }
  func.func @transform_1(%arg0: i32) -> (i32, i32) {
    %c0_i32 = arith.constant 0 : i32
    %c0_i32_0 = arith.constant 0 : i32
    %c0_i32_1 = arith.constant 0 : i32
    return %c0_i32, %c0_i32_0 : i32, i32
  }
  func.func @transform_2(%arg0: i32) -> (i32, i32, i32) {
    %c0_i32 = arith.constant 0 : i32
    %c0_i32_0 = arith.constant 0 : i32
    %c0_i32_1 = arith.constant 0 : i32
    %c0_i32_2 = arith.constant 0 : i32
    return %c0_i32, %c0_i32_0, %c0_i32_1 : i32, i32, i32
  }
  func.func @transform_3(%arg0: i32) -> (i32, i32, i32) {
    %c0_i32 = arith.constant 0 : i32
    %c0_i32_0 = arith.constant 0 : i32
    %c0_i32_1 = arith.constant 0 : i32
    %c0_i32_2 = arith.constant 0 : i32
    return %c0_i32, %c0_i32_0, %c0_i32_1 : i32, i32, i32
  }
  func.func @transform_4(%arg0: i32) -> (i32, i32) {
    %c0_i32 = arith.constant 0 : i32
    %c0_i32_0 = arith.constant 0 : i32
    %c0_i32_1 = arith.constant 0 : i32
    return %c0_i32, %c0_i32_0 : i32, i32
  }
  func.func @transform_5(%arg0: i32) -> (i32, i32) {
    %c0_i32 = arith.constant 0 : i32
    %c0_i32_0 = arith.constant 0 : i32
    %c0_i32_1 = arith.constant 0 : i32
    return %c0_i32, %c0_i32_0 : i32, i32
  }
  func.func @transform_6(%arg0: i32) -> (i32, i32) {
    %c0_i32 = arith.constant 0 : i32
    %c0_i32_0 = arith.constant 0 : i32
    %c0_i32_1 = arith.constant 0 : i32
    return %c0_i32, %c0_i32_0 : i32, i32
  }
  func.func @transform_7(%arg0: i32) -> (i32, i32) {
    %c0_i32 = arith.constant 0 : i32
    %c0_i32_0 = arith.constant 0 : i32
    %c0_i32_1 = arith.constant 0 : i32
    return %c0_i32, %c0_i32_0 : i32, i32
  }
  func.func @transform_8(%arg0: i32) -> (i32, i32) {
    %c0_i32 = arith.constant 0 : i32
    %c0_i32_0 = arith.constant 0 : i32
    %c0_i32_1 = arith.constant 0 : i32
    return %c0_i32, %c0_i32_0 : i32, i32
  }
  func.func @transform_9(%arg0: i32) -> (i32, i32) {
    %c0_i32 = arith.constant 0 : i32
    %c0_i32_0 = arith.constant 0 : i32
    return %c0_i32, %arg0 : i32, i32
  }
}

</mosaic_0001>

<bundles_post_ra>
// kernel: tpu_custom_call.1
= control target key start
LH: loop header
LB: loop body
LE: loop exit
PB: predicated region body
PF: predicated region fallthrough
CT: control target
= control target key end

     0   :  { %s1210_s0 = inlined_call_operand.vmem [shape: bf16[25,256], index: 0, kind: input, shape index: {}]   ;;  %s1211_s1 = inlined_call_operand.vmem [shape: bf16[48,25], index: 1, kind: input, shape index: {}]   ;;  %s1212_s2 = inlined_call_operand.vmem [shape: bf16[2,32,32], index: 2, kind: input, shape index: {}]   ;;  %s1213_s3 = inlined_call_operand.vmem [shape: f32[2,32,1], index: 3, kind: input, shape index: {}]   ;;  %s1214_s4 = inlined_call_operand.vmem [shape: bf16[16,32], index: 4, kind: input, shape index: {}]   ;;  %s1215_s5 = inlined_call_operand.vmem [shape: f32[16,1], index: 5, kind: input, shape index: {}]   ;;  %s1216_s6 = inlined_call_operand.vmem [shape: bf16[16,16], index: 6, kind: input, shape index: {}]   ;;  %s1217_s7 = inlined_call_operand.vmem [shape: bf16[1,16], index: 7, kind: input, shape index: {}]   ;;  %s1218_s8 = inlined_call_operand.<no memory space> [shape: f32[1,1], index: 8, kind: input, shape index: {}]   ;;  %s1219_s9 = inlined_call_operand.hbm [shape: f32[1,256], index: 9, kind: output, shape index: {}]  }
   0x1   :  { %v14_v0 = vstv %s1218_s8 }
   0x2   :  { %15 = vst [vmem:[#allocation2] sm:$0x1] %v14_v0 }
   0x3   :  { %16 = vsyncpa [#allocation5], 0 }
   0x4   :  { %18 = vsyncpa [#allocation5 + $0x1], 0  ;;  %s1047_s11 = smov 0   ;;  %s1049_s12 = smov 0  }
   0x5   :  { %s1051_s13 = smov 0   ;;  %s1053_s14 = smov 0  }
   0x6 LB: > { %s796_s8 = sadd.s32 4294967295, %s990_s14   ;;  %s797_s15 = sadd.s32 4294967294, %s990_s14   ;;  %s990_s14 = sphi %s1053_s14, %s1225_s14   ;;  %s986_s13 = sphi %s1051_s13, %s1224_s13   ;;  %s982_s12 = sphi %s1049_s12, %s1223_s12   ;;  %s978_s11 = sphi %s1047_s11, %s1222_s11  }
   0x7   : > { %s1070_s16 = sadd.s32 1, %s990_s14   ;;  %s31_s17 = sadd.s32 1, %s986_s13 }
   0x8   : > { %s28_s18 = ssub.s32 %s990_s14, %s1070_s16  ;;  %p38_p0 = scmp.ne.s32.totalorder %s986_s13, %s982_s12 }
   0x9   : > { %p29_p1 = scmp.eq.s32.totalorder %s28_s18, 0  ;;  %p39_p2 = scmp.eq.s32.totalorder %s990_s14, 0 }
   0xa   : > { %p236_p3 = scmp.eq.s32.totalorder %s796_s8, 1  ;;  %p241_p4 = scmp.ne.s32.totalorder %s982_s12, %s978_s11 }
   0xb   : > { %s1083_s19 = scalar_select %p29_p1, %s986_s13, %s31_s17  }
   0xc   : > { %p40_p5 = por %p39_p2, %p38_p0  ;;  %p1085_p6 = por %p236_p3, %p38_p0 }
   0xd   : > { %p242_p7 = scmp.eq.s32.totalorder %s797_s15, 1  ;;  %p799_p9 = scmp.ge.s32.totalorder %s990_s14, 2 }
   0xf   : > { %p1089_p8 = por %p242_p7, %p241_p4  ;;  %282 = sbr.rel (%p799_p9) target bundleno = 28 (0x1c), region = 48 }
  0x14   : > { %285 = sbr.rel (!%p40_p5) target bundleno = 28 (0x1c), region = 52  ;;  %s287_s22 = sand.u32 (%p40_p5), 1, %s986_s13  }
  0x15   : > { %s801_s23 = sshll.u32 (%p40_p5), %s990_s14, 2  ;;  %s800_s24 = sshll.u32 (%p40_p5), %s287_s22, 4 }
  0x16   : > { %s291_s27 = scalar_lea.vmem (%p40_p5), %s1210_s0, %s801_s23  ;;  %s289_s28 = scalar_lea.vmem (%p40_p5), [#allocation3], %s800_s24 }
  0x17   : > { %v308_v1 = vld [vmem:[%s291_s27] sm:$0xf] (%p40_p5)  ;;  %v310_v2 = vld [vmem:[%s291_s27 + $0x8] sm:$0xf] (%p40_p5)  ;;  %v312_v3 = vld [vmem:[%s291_s27 + $0x10] sm:$0xf] (%p40_p5) }
  0x18   : > { %309 = vst [vmem:[%s289_s28] sm:$0xf] (%p40_p5), %v308_v1  ;;  %v314_v4 = vld [vmem:[%s291_s27 + $0x18] sm:$0xf] (%p40_p5) }
  0x19   : > { %311 = vst [vmem:[%s289_s28 + $0x4] sm:$0xf] %v310_v2 }
  0x1a   : > { %313 = vst [vmem:[%s289_s28 + $0x8] sm:$0xf] %v312_v3 }
  0x1b   : > { %315 = vst [vmem:[%s289_s28 + $0xc] sm:$0xf] %v314_v4 }
  0x1c PF: > { %p802_p10 = scmp.ge.s32.totalorder %s990_s14, 1  ;;  %p346_p11 = scmp.lt.s32.totalorder %s990_s14, 3 }
  0x1e   : > { %p347_p12 = pnand %p802_p10, %p346_p11 }
  0x1f   : > { %s1104_s29 = sand.u32 (!%p347_p12), 1, %s982_s12   ;;  %s732_s25 = scalar_lea.hbm (!%p347_p12), %s1219_s9, %s796_s8 }
  0x20   : > { %350 = sbr.rel (%p347_p12) target bundleno = 1000 (0x3e8), region = 93  ;;  %s803_s30 = sshll.u32 (!%p347_p12), %s1104_s29, 4 }
  0x21   : > { %s355_s10 = scalar_lea.vmem (!%p347_p12), [#allocation3], %s803_s30  ;;  %s386_s26 = scalar_lea.vmem (!%p347_p12), [#allocation4], %s1104_s29 }
  0x22   : > { %s734_s27 = sshll.u32 (!%p347_p12), %s386_s26, 4  ;;  %s736_s28 = sshll.u32 (!%p347_p12), %s732_s25, 4  ;;  %s735_s27 = int_to_ptr.vmem [resolvable:$true] %s734_s27  ;;  %s737_s28 = int_to_ptr.hbm [resolvable:$true] %s736_s28 }
  0x23   : > { %s724_s8 = scalar_lea.sflag (!%p347_p12), [#allocation5], %s1104_s29  ;;  %s942_s30 = sshra.s32 (!%p347_p12), %s737_s28, 4  ;;  %s943_s30 = int_to_ptr.hbm [resolvable:$true] %s942_s30 }
  0x24   : > { %s948_s18 = scalar_lea.hbm (!%p347_p12), %s1219_s9, 2  ;;  %p949_p2 = scmp.lt.s32.totalorder (!%p347_p12), %s943_s30, %s1219_s9 }
  0x25   : > { %vm434_vm0 = vcmask 1043456   ;;  %vm435_vm1 = vcmask 1044480   ;;  %v992_v5 = vmov 65535   ;;  %v822_v7 = vld [vmem:[%s355_s10 + $0x8] sm:$0xf]  ;;  %v869_v12 = vld [vmem:[%s355_s10] sm:$0xff] }
  0x26   : > { %v436_v6 = vsel %vm434_vm0, 4294967295, %v992_v5  ;;  %v870_v8 = vld [vmem:[%s355_s10 + $0x8] sm:$0x10]  ;;  %v871_v13 = vld [vmem:[%s1211_s1] sm:$0xff]  ;;  %vm424_vm2 = vcmask 203776   ;;  %v477_v16 = vld [vmem:[%s1213_s3 + $0x10] sm:$0xff] }
  0x27   : > { %v437_v9 = vsel %vm435_vm1, %v436_v6, 0  ;;  %v823_v10 = vor.u32 %v870_v8, %v822_v7  ;;  %v872_v14 = vld [vmem:[%s1211_s1 + $0x8] sm:$0xff]  ;;  %v475_v17 = vld [vmem:[%s1213_s3] sm:$0xff]  ;;  %v993_v18 = vmov 0   ;;  %v478_v20 = vld [vmem:[%s1213_s3 + $0x18] sm:$0xff]  ;;  %vm509_vm3 = vcmask 261120  }
  0x28   : > { %921 = vset.pattern.permute.xlu0 %v993_v18  ;;  %922 = vset.pattern.permute.xlu1 %v993_v18  ;;  %v476_v21 = vld [vmem:[%s1213_s3 + $0x8] sm:$0xff]  ;;  %v841_v23 = vld [vmem:[%s1213_s3 + $0x20] sm:$0xff]  ;;  %v843_v41 = vld [vmem:[%s1213_s3 + $0x30] sm:$0xff]  ;;  %vm658_vm4 = vcmask 130048   ;;  %s944_s10 = scalar_lea.hbm %s943_s30, 1 }
  0x29   : > { %v439_v11 = vand.u32 %v823_v10, %v437_v9  ;;  %491 = vperm.xlu0 %921, %v477_v16   ;;  %481 = vperm.xlu1 %922, %v475_v17   ;;  %v842_v24 = vld [vmem:[%s1213_s3 + $0x28] sm:$0xff]  ;;  %v680_v31 = vld [vmem:[#allocation2] sm:$0x1]  ;;  %v844_v51 = vld [vmem:[%s1213_s3 + $0x38] sm:$0xff]  ;;  %p945_p13 = scmp.ne.s32.totalorder %s943_s30, %s944_s10  ;;  %p950_p3 = scmp.lt.s32.totalorder %s948_s18, %s944_s10 }
  0x2a   : > { %923 = vset.pattern.permute.xlu2 %v993_v18  ;;  %v615_v30 = vld [vmem:[%s1215_s5 + $0x8] sm:$0xff]  ;;  %v874_v34 = vld [vmem:[%s1212_s2] sm:$0xff]  ;;  %v876_v56 = vld [vmem:[%s1212_s2 + $0x10] sm:$0xff] }
  0x2b   : > { %447 = vmatpush.bf16.msra.mxu0 %v439_v11  ;;  %v875_v35 = vld [vmem:[%s1212_s2 + $0x8] sm:$0xff]  ;;  %563 = vperm.xlu2 %923, %v843_v41   ;;  %v614_v57 = vld [vmem:[%s1215_s5] sm:$0xff]  ;;  %v877_v58 = vld [vmem:[%s1212_s2 + $0x18] sm:$0xff]  ;;  %p946_p0 = pnand %p945_p13, %p1085_p6  ;;  %p951_p4 = por %p950_p3, %p949_p2 }
  0x2d   : > { %p947_p1 = pneg %p946_p0 }
  0x2f   : > { %448 = vmatpush.bf16.msra.mxu0 %v869_v12  ;;  %p952_p5 = pnand %p951_p4, %p947_p1 }
  0x31   : > { %496 = vperm.xlu0 %921, %v478_v20   ;;  %486 = vperm.xlu1 %922, %v476_v21  }
  0x32   : > { %824 = vmatmul.msk.bf16.vlgmr.msra.gmra.mxu0 %vm424_vm2, %v871_v13  ;;  %v878_v13 = vld [vmem:[%s1214_s4] sm:$0xff] }
  0x33   : > { %568 = vperm.xlu2 %923, %v844_v51  }
  0x39   : > { %553 = vperm.xlu0 %921, %v841_v23   ;;  %558 = vperm.xlu1 %922, %v842_v24   ;;  %v879_v24 = vld [vmem:[%s1216_s6] sm:$0xff] }
  0x3b   : > { %618 = vperm.xlu2 %923, %v614_v57  }
  0x41   : > { %623 = vperm.xlu0 %921, %v615_v30   ;;  %683 = vperm.xlu1 %922, %v680_v31  }
  0x42   : > { %825 = vmatmul.msk.bf16.gmra.mxu0 %vm424_vm2, %v872_v14  ;;  %v873_v14 = vld [vmem:[%s1211_s1 + $0x10] sm:$0xff] }
  0x52   : > { %826 = vmatmul.msk.bf16.gmra.mxu0 %vm424_vm2, %v873_v14 }
  0x85   : > { %v564_v61 = vpop.permute.xlu2 %563 }
  0x8d   : > { %v569_v1 = vpop.permute.xlu2 %568 }
  0x95   : > { %v619_v16 = vpop.permute.xlu2 %618 }
  0x9b   : > { %v492_v38 = vpop.permute.xlu0 %491  ;;  %v482_v39 = vpop.permute.xlu1 %481 }
  0xa3   : > { %v497_v42 = vpop.permute.xlu0 %496  ;;  %v487_v44 = vpop.permute.xlu1 %486 }
  0xab   : > { %v559_v63 = vpop.permute.xlu1 %558  ;;  %v554_v5 = vpop.permute.xlu0 %553 }
  0xaf   : > { %v450_v15 = vpop.f32.mrf.mxu0 }
  0xb0   : > { %v465_v32 = vmax.f32 %v450_v15, 0.0 }
  0xb3   : > { %v624_v18 = vpop.permute.xlu0 %623 }
  0xb7   : > { %v452_v19 = vpop.f32.mrf.mxu0 }
  0xb8   : > { %v466_v28 = vmax.f32 %v452_v19, 0.0 }
  0xba   : > { %v469_v33 = vpack.c.bf16 %v466_v28, %v465_v32 }
  0xbf   : > { %v455_v22 = vpop.f32.mrf.mxu0 }
  0xc0   : > { %v467_v26 = vmax.f32 %v455_v22, 0.0 }
  0xc7   : > { %v457_v25 = vpop.f32.mrf.mxu0 }
  0xc8   : > { %v468_v27 = vmax.f32 %v457_v25, 0.0 }
  0xca   : > { %v470_v29 = vpack.c.bf16 %v468_v27, %v467_v26 }
  0xcc   : > { %522 = vmatpush.bf16.msra.mxu1 %v470_v29 }
  0xcf   : > { %v460_v25 = vpop.f32.mrf.mxu0 }
  0xd0   : > { %523 = vmatpush.bf16.msra.mxu1 %v469_v33 }
  0xd3   : > { %835 = vmatmul.msk.bf16.vlgmr.msra.gmra.mxu1 %vm509_vm3, %v874_v34  ;;  %v679_v34 = vld [vmem:[%s1217_s7] sm:$0x1] }
  0xd7   : > { %v462_v28 = vpop.f32.mrf.mxu0 }
  0xe3   : > { %836 = vmatmul.msk.bf16.gmra.mxu1 %vm509_vm3, %v875_v35  ;;  %v684_v35 = vpop.permute.xlu1 %683 }
 0x150   : > { %v525_v36 = vpop.f32.mrf.mxu1 }
 0x151   : > { %v526_v48 = vadd.f32 %v525_v36, %v482_v39  ;;  %v686_v36 = vperm.slane %v684_v35, 0 }
 0x153   : > { %v535_v54 = vmax.f32 %v526_v48, 0.0 }
 0x158   : > { %v527_v37 = vpop.f32.mrf.mxu1 }
 0x159   : > { %v528_v46 = vadd.f32 %v527_v37, %v487_v44 }
 0x15b   : > { %v536_v52 = vmax.f32 %v528_v46, 0.0 }
 0x15d   : > { %v539_v55 = vpack.c.bf16 %v536_v52, %v535_v54 }
 0x160   : > { %v530_v40 = vpop.f32.mrf.mxu1 }
 0x161   : > { %v531_v43 = vadd.f32 %v530_v40, %v492_v38 }
 0x163   : > { %v537_v49 = vmax.f32 %v531_v43, 0.0 }
 0x168   : > { %v532_v45 = vpop.f32.mrf.mxu1 }
 0x169   : > { %v533_v47 = vadd.f32 %v532_v45, %v497_v42 }
 0x16b   : > { %v538_v50 = vmax.f32 %v533_v47, 0.0 }
 0x16d   : > { %v540_v53 = vpack.c.bf16 %v538_v50, %v537_v49 }
 0x16f   : > { %593 = vmatpush.bf16.msra.mxu2 %v540_v53 }
 0x173   : > { %594 = vmatpush.bf16.msra.mxu2 %v539_v55 }
 0x176   : > { %853 = vmatmul.msk.bf16.vlgmr.msra.gmra.mxu2 %vm509_vm3, %v876_v56 }
 0x186   : > { %854 = vmatmul.msk.bf16.gmra.mxu2 %vm509_vm3, %v877_v58 }
 0x1f9   : > { %v596_v59 = vpop.f32.mrf.mxu2 }
 0x1fa   : > { %v597_v6 = vadd.f32 %v596_v59, %v554_v5 }
 0x1fc   : > { %v606_v11 = vmax.f32 %v597_v6, 0.0 }
 0x201   : > { %v598_v60 = vpop.f32.mrf.mxu2 }
 0x202   : > { %v599_v3 = vadd.f32 %v598_v60, %v559_v63 }
 0x204   : > { %v607_v9 = vmax.f32 %v599_v3, 0.0 }
 0x206   : > { %v610_v12 = vpack.c.bf16 %v607_v9, %v606_v11 }
 0x209   : > { %v601_v62 = vpop.f32.mrf.mxu2 }
 0x20a   : > { %v602_v0 = vadd.f32 %v601_v62, %v564_v61 }
 0x20c   : > { %v608_v7 = vmax.f32 %v602_v0, 0.0 }
 0x211   : > { %v603_v2 = vpop.f32.mrf.mxu2 }
 0x212   : > { %v604_v4 = vadd.f32 %v603_v2, %v569_v1 }
 0x214   : > { %v609_v8 = vmax.f32 %v604_v4, 0.0 }
 0x216   : > { %v611_v10 = vpack.c.bf16 %v609_v8, %v608_v7 }
 0x218   : > { %640 = vmatpush.bf16.msra.mxu3 %v611_v10 }
 0x21c   : > { %641 = vmatpush.bf16.msra.mxu3 %v610_v12 }
 0x21f   : > { %859 = vmatmul.msk.bf16.vlgmr.msra.gmra.mxu3 %vm509_vm3, %v878_v13 }
 0x2a2   : > { %v643_v15 = vpop.f32.mrf.mxu3 }
 0x2a3   : > { %v644_v17 = vadd.f32 %v643_v15, %v619_v16 }
 0x2a5   : > { %v648_v21 = vmax.f32 %v644_v17, 0.0 }
 0x2aa   : > { %v645_v19 = vpop.f32.mrf.mxu3 }
 0x2ab   : > { %v646_v20 = vadd.f32 %v645_v19, %v624_v18 }
 0x2ad   : > { %v649_v22 = vmax.f32 %v646_v20, 0.0 }
 0x2af   : > { %v650_v23 = vpack.c.bf16 %v649_v22, %v648_v21 }
 0x2b1   : > { %669 = vmatpush.bf16.msrb.mxu3 %v650_v23 }
 0x2b4   : > { %864 = vmatmul.msk.bf16.vlgmr.msrb.gmra.mxu3 %vm658_vm4, %v879_v24 }
 0x337   : > { %v671_v26 = vpop.f32.mrf.mxu3 }
 0x338   : > { %v672_v27 = vadd.f32 %v671_v26, %v460_v25 }
 0x33a   : > { %v676_v31 = vmax.f32 %v672_v27, 0.0 }
 0x33f   : > { %v673_v29 = vpop.f32.mrf.mxu3 }
 0x340   : > { %v674_v30 = vadd.f32 %v673_v29, %v462_v28 }
 0x342   : > { %v677_v32 = vmax.f32 %v674_v30, 0.0 }
 0x344   : > { %v678_v33 = vpack.c.bf16 %v677_v32, %v676_v31 }
 0x346   : > { %697 = vmatpush.bf16.msrb.mxu1 %v678_v33 }
 0x349   : > { %865 = vmatmul.msk.bf16.vlgmr.msrb.gmra.mxu1 %vm658_vm4, %v679_v34 }
 0x3c6   : > { %v699_v37 = vpop.f32.mrf.mxu1 }
 0x3c7   : > { %v700_v38 = vadd.f32 %v699_v37, %v686_v36 }
 0x3c9   : > { %v866_v39 = vmul.f32 -1.442695, %v700_v38 }
 0x3cb   : > { %924 = vpow2.f32 %v866_v39 }
 0x3ce   : > { %v701_v40 = vpop.f32.mrf.mxu1 }
 0x3d1   : > { %v925_v41 = vpop.eup %924 }
 0x3d2   : > { %v706_v42 = vadd.f32 1.0, %v925_v41 }
 0x3d4   : > { %926 = vrcp.f32 %v706_v42  ;;  %v718_v46 = vand.u32 2147483648, %v706_v42  ;;  %v716_v48 = vand.u32 2147483647, %v706_v42  ;;  %vm712_vm6 = vweird.f32 %v706_v42 }
 0x3d6   : > { %v719_v50 = vor.u32 1.1754944e-38, %v718_v46  ;;  %vm717_vm8 = vcmp.eq.f32.partialorder %v716_v48, 8.507059e+37 }
 0x3da   : > { %v927_v43 = vpop.eup %926 }
 0x3db   : > { %v708_v44 = vmul.f32 %v927_v43, %v706_v42  ;;  %vm713_vm5 = vweird.f32 %v927_v43 }
 0x3dc   : > { %vm714_vm7 = vmor %vm712_vm6, %vm713_vm5 }
 0x3dd   : > { %v709_v45 = vsub.f32 1.0, %v708_v44 }
 0x3df   : > { %v710_v47 = vmul.f32 %v927_v43, %v709_v45 }
 0x3e1   : > { %v711_v49 = vadd.f32 %v927_v43, %v710_v47 }
 0x3e3   : > { %v715_v51 = vsel %vm714_vm7, %v927_v43, %v711_v49 }
 0x3e4   : > { %v720_v52 = vsel %vm717_vm8, %v719_v50, %v715_v51 }
 0x3e5   : > { %722 = vst [vmem:[%s386_s26] sm:$0x1] %v720_v52 }
 0x3e6   : > { %955 = shalt.err (!%p952_p5)
}
 0x3e7   : > { %880 = dma.vmem_to_hbm [thread:$0]  (%p1085_p6), %s735_s27, 16, %s737_s28, %s724_s8  }
 0x3e8 PF: > { %s748_s29 = sand.u32 1, %s978_s11   ;;  %p883_p7 = pnand %p799_p9, %p1089_p8 }
 0x3e9   : > { %s749_s24 = scalar_lea.sflag [#allocation5], %s748_s29 }
 0x3ea   : > { %p884_p10 = pneg %p883_p7 }
 0x3ec   : > { %973 = dma.done.wait (%p884_p10), %s749_s24, 16  }
 0x3ed   : > { %975 = vsyncadd (%p884_p10), %s749_s24, 4294967280  ;;  %p21_p11 = scmp.ge.s32.totalorder %s1070_s16, 4   ;;  %s1222_s11 = smov %s982_s12 }
 0x3ee   : > { %s1223_s12 = smov %s986_s13  ;;  %s1224_s13 = smov %s1083_s19 }
 0x3ef   : > { %s1225_s14 = smov %s1070_s16  ;;  %23 = sbr.rel (!%p21_p11) target bundleno = 6 (0x6), region = 139 }
 0x3f4   :  { %754 = vsyncpa [#allocation5], 1 }
 0x3f5   :  { %756 = vsyncpa [#allocation5 + $0x1], 1 }

</bundles_post_ra>
